<compile_context>
chip_gen: v7x
topology: tpu7x:2x2x1
jax: 0.10.0
libtpu: 0.0.40
codegen_flags: <defaults>
</compile_context>

<pallas_src>
import functools

import jax
import jax.numpy as jnp
from jax.experimental import pallas as pl
from jax.experimental.pallas import tpu as pltpu

_LANES = 128
_SUBLANES = 8


def _cox_loss_kernel(n_ref, pred_ref, vital_ref, triu_ref, stril_ref, out_ref,
                     carry_ref, sp_ref, sv_ref, svlr_ref):
    """One grid step = one (R, 128) row chunk of the flattened inputs."""
    step = pl.program_id(0)

    @pl.when(step == 0)
    def _init():
        carry_ref[...] = jnp.zeros_like(carry_ref)
        sp_ref[...] = jnp.zeros_like(sp_ref)
        sv_ref[...] = jnp.zeros_like(sv_ref)
        svlr_ref[...] = jnp.zeros_like(svlr_ref)

    pred = pred_ref[...]                      # (R, 128) f32, zero padded tail
    vital = vital_ref[...]                    # (R, 128) f32, zero padded tail

    # Padded slots see exp(0) = 1, but padding is strictly at the tail, so it
    # only perturbs cum_hazard at padded positions, where vital == 0 -> no
    # contribution to the loss.  No validity mask needed.
    # TODO(synk): exp() is not max-shifted (faithful to the PyTorch module);
    # a streaming log-cumsum-exp would be more robust for |pred| >~ 88.
    hazard = jnp.exp(pred)                                            # (R,128)

    # 1) Intra-row inclusive prefix sums via the constant 128x128 upper-tri
    #    matmul (full-width MXU tiles).
    #    TODO(synk): on v5e a 7-step pltpu.roll lane scan could replace this
    #    fp32 matmul if profiling shows the MXU as the binding slot there.
    row_prefix = jnp.dot(hazard, triu_ref[...],
                         preferred_element_type=jnp.float32)          # (R,128)
    # Per-row totals = last lane of the inclusive prefix (no extra reduce).
    row_totals = row_prefix[:, _LANES - 1:_LANES]                     # (R, 1)

    # 2) Cross-row exclusive prefix within the chunk: constant (R, R) strict
    #    lower-tri matmul.  R is a fixed chunk size, so this no longer scales
    #    with N (bounded VMEM on v5e/v6e/v7x).
    intra_carry = jnp.dot(stril_ref[...], row_totals,
                          preferred_element_type=jnp.float32)         # (R, 1)

    # 3) Running carry from all previous chunks (scalar VMEM scratch).
    cum_hazard = row_prefix + (intra_carry + carry_ref[...])          # (R,128)
    log_risk = jnp.log(cum_hazard)                                    # (R,128)

    def _sum(x):   # full reduction to (1, 1): lanes first, then sublanes
        return jnp.sum(jnp.sum(x, axis=1, keepdims=True), axis=0, keepdims=True)

    sp_ref[...] += _sum(pred)                 # pads are 0 -> exact
    sv_ref[...] += _sum(vital)                # pads are 0 -> exact
    svlr_ref[...] += _sum(vital * log_risk)   # pads have vital == 0
    carry_ref[...] += jnp.sum(row_totals, axis=0, keepdims=True)

    @pl.when(step == pl.num_programs(0) - 1)
    def _finalize():
        n_f = n_ref[0].astype(jnp.float32)    # true (unpadded) N
        s_pred = sp_ref[...]
        s_vital = sv_ref[...]
        s_vlr = svlr_ref[...]
        # sum((pred.T - log_risk) * vital) folded analytically (NxN never formed).
        sum_censored = s_vital * s_pred - n_f * s_vlr
        # neg_likelihood = -sum(censored_likelihood) / sum(vital_status)
        out_ref[...] = -sum_censored / s_vital


@functools.partial(jax.jit, static_argnames=("max_block_rows",))
def cox_loss(pred, vital_status, *, max_block_rows=512):
    """COXLoss.forward for (N, 1) column-vector inputs -> scalar f32.

    Flat (N,) inputs are also accepted and treated as the (N, 1) column.
    """
    if pred.ndim > 2 or (pred.ndim == 2 and pred.shape[1] != 1):
        raise ValueError("cox_loss expects pred of shape (N, 1) or (N,)")
    if vital_status.shape != pred.shape:
        raise ValueError("vital_status must match pred's shape")

    pred_flat = pred.astype(jnp.float32).reshape(-1)
    vital_flat = vital_status.astype(jnp.float32).reshape(-1)
    n = pred_flat.shape[0]

    # Lane-dense repack: flattened vector -> (b, 128) rows, b a multiple of 8.
    b = -(-n // _LANES)
    b = -(-b // _SUBLANES) * _SUBLANES
    # Fixed chunk of r rows per grid step (multiple of 8, capped so per-step
    # VMEM stays O(chunk) no matter how large N gets).
    r = max(_SUBLANES, (min(int(max_block_rows), b) // _SUBLANES) * _SUBLANES)
    b = -(-b // r) * r
    grid = b // r
    n_pad = b * _LANES

    pred2d = jnp.pad(pred_flat, (0, n_pad - n)).reshape(b, _LANES)
    vital2d = jnp.pad(vital_flat, (0, n_pad - n)).reshape(b, _LANES)

    # Constant prefix matrices (folded to compile-time constants under jit,
    # DMA'd into VMEM once since their block index never changes).
    li = jax.lax.broadcasted_iota(jnp.int32, (_LANES, _LANES), 0)
    lj = jax.lax.broadcasted_iota(jnp.int32, (_LANES, _LANES), 1)
    triu = (li <= lj).astype(jnp.float32)               # (128, 128) inclusive
    ri = jax.lax.broadcasted_iota(jnp.int32, (r, r), 0)
    rj = jax.lax.broadcasted_iota(jnp.int32, (r, r), 1)
    stril = (rj < ri).astype(jnp.float32)               # (r, r) strict lower

    n_arr = jnp.array([n], dtype=jnp.int32)             # scalar prefetch (SMEM)

    out = pl.pallas_call(
        _cox_loss_kernel,
        out_shape=jax.ShapeDtypeStruct((1, 1), jnp.float32),
        grid_spec=pltpu.PrefetchScalarGridSpec(
            num_scalar_prefetch=1,
            grid=(grid,),
            in_specs=[
                pl.BlockSpec((r, _LANES), lambda i, n_s: (i, 0)),       # pred
                pl.BlockSpec((r, _LANES), lambda i, n_s: (i, 0)),       # vital
                pl.BlockSpec((_LANES, _LANES), lambda i, n_s: (0, 0)),  # triu
                pl.BlockSpec((r, r), lambda i, n_s: (0, 0)),            # stril
            ],
            out_specs=pl.BlockSpec((1, 1), lambda i, n_s: (0, 0)),
            scratch_shapes=[pltpu.VMEM((1, 1), jnp.float32)] * 4,
        ),
        compiler_params=pltpu.CompilerParams(
            dimension_semantics=("arbitrary",)),   # sequential carry over chunks
    )(n_arr, pred2d, vital2d, triu, stril)
    return out[0, 0]


def _cox_loss_reference(pred, vital):
    # Literal transcription of the PyTorch forward (for (N, 1) inputs).
    hazard_ratio = jnp.exp(pred)
    log_risk = jnp.log(jnp.cumsum(hazard_ratio, axis=0))
    uncensored_likelihood = pred.T - log_risk            # (N, N) via broadcast
    censored_likelihood = uncensored_likelihood * vital  # row-scaled by vital
    num_observed_events = jnp.sum(vital)
    return -jnp.sum(censored_likelihood) / num_observed_events


if __name__ == "__main__":
    key = jax.random.PRNGKey(0)

    # Small case matching the module's typical usage: one risk score per sample.
    n = 8
    pred = jax.random.normal(key, (n, 1), dtype=jnp.float32)
    vital = jnp.array([1., 0., 1., 1., 0., 1., 0., 1.],
                      dtype=jnp.float32).reshape(n, 1)
    loss = cox_loss(pred, vital)
    jax.block_until_ready(loss)
    ref = _cox_loss_reference(pred, vital)
    assert jnp.allclose(loss, ref, rtol=1e-4, atol=1e-4), (loss, ref)

    # Several 128-lane rows within one chunk (exercises the cross-row carry).
    n2 = 300
    k1, k2 = jax.random.split(key)
    pred2 = jax.random.normal(k1, (n2, 1), dtype=jnp.float32)
    vital2 = (jax.random.uniform(k2, (n2, 1)) < 0.7).astype(jnp.float32)
    loss2 = cox_loss(pred2, vital2)
    jax.block_until_ready(loss2)
    ref2 = _cox_loss_reference(pred2, vital2)
    assert jnp.allclose(loss2, ref2, rtol=1e-4, atol=1e-4), (loss2, ref2)

    # Multi-chunk streamed path: small max_block_rows forces grid > 1 so the
    # running carry / scratch accumulators across grid steps are exercised.
    n3 = 2000
    k3, k4 = jax.random.split(k2)
    pred3 = jax.random.normal(k3, (n3, 1), dtype=jnp.float32) * 0.5
    vital3 = (jax.random.uniform(k4, (n3, 1)) < 0.5).astype(jnp.float32)
    loss3 = cox_loss(pred3, vital3, max_block_rows=8)
    jax.block_until_ready(loss3)
    ref3 = _cox_loss_reference(pred3, vital3)
    assert jnp.allclose(loss3, ref3, rtol=1e-3, atol=1e-3), (loss3, ref3)

    print("KERNEL_OK")
</pallas_src>

<mosaic_0001>
module attributes {stable_mosaic.version = 11 : i64} {
  func.func @_cox_loss_kernel(%arg0: i32, %arg1: memref<1xi32, #tpu.memory_space<smem>>, %arg2: memref<8x128xf32, #tpu.memory_space<vmem>>, %arg3: memref<8x128xf32, #tpu.memory_space<vmem>>, %arg4: memref<128x128xf32, #tpu.memory_space<vmem>>, %arg5: memref<8x8xf32, #tpu.memory_space<vmem>>, %arg6: memref<1x1xf32, #tpu.memory_space<vmem>>, %arg7: memref<1x1xf32, #tpu.memory_space<vmem>>, %arg8: memref<1x1xf32, #tpu.memory_space<vmem>>, %arg9: memref<1x1xf32, #tpu.memory_space<vmem>>, %arg10: memref<1x1xf32, #tpu.memory_space<vmem>>) attributes {dimension_semantics = [#tpu.dimension_semantics<arbitrary>], iteration_bounds = array<i64: 1>, scalar_prefetch = 1 : i64, scratch_operands = 4 : i64, tpu.core_type = #tpu.core_type<tc>, window_params = [{transform_indices = @transform_0, window_bounds = array<i64: 8, 128>}, {transform_indices = @transform_1, window_bounds = array<i64: 8, 128>}, {pipeline_mode = #tpu.pipeline_mode<synchronous>, transform_indices = @transform_2, window_bounds = array<i64: 128, 128>}, {pipeline_mode = #tpu.pipeline_mode<synchronous>, transform_indices = @transform_3, window_bounds = array<i64: 8, 8>}, {pipeline_mode = #tpu.pipeline_mode<synchronous>, transform_indices = @transform_4, window_bounds = array<i64: 1, 1>}]} {
    %c0_i32 = arith.constant 0 : i32
    %0 = arith.cmpi eq, %arg0, %c0_i32 : i32
    %1 = arith.extui %0 : i1 to i32
    %c0_i32_0 = arith.constant 0 : i32
    %2 = arith.cmpi ne, %1, %c0_i32_0 : i32
    scf.if %2 {
      %cst_36 = arith.constant 0.000000e+00 : f32
      %47 = vector.broadcast %cst_36 : f32 to vector<1x1xf32>
      %c0_37 = arith.constant 0 : index
      %c0_38 = arith.constant 0 : index
      %48 = vector.load %arg7[%c0_37, %c0_38] : memref<1x1xf32, #tpu.memory_space<vmem>>, vector<1x1xf32>
      tpu.vector_store %arg7[%c0_37, %c0_38], %47 {strides = array<i32>} : memref<1x1xf32, #tpu.memory_space<vmem>>, vector<1x1xf32>,
      %cst_39 = arith.constant 0.000000e+00 : f32
      %49 = vector.broadcast %cst_39 : f32 to vector<1x1xf32>
      %c0_40 = arith.constant 0 : index
      %c0_41 = arith.constant 0 : index
      %50 = vector.load %arg8[%c0_40, %c0_41] : memref<1x1xf32, #tpu.memory_space<vmem>>, vector<1x1xf32>
      tpu.vector_store %arg8[%c0_40, %c0_41], %49 {strides = array<i32>} : memref<1x1xf32, #tpu.memory_space<vmem>>, vector<1x1xf32>,
      %cst_42 = arith.constant 0.000000e+00 : f32
      %51 = vector.broadcast %cst_42 : f32 to vector<1x1xf32>
      %c0_43 = arith.constant 0 : index
      %c0_44 = arith.constant 0 : index
      %52 = vector.load %arg9[%c0_43, %c0_44] : memref<1x1xf32, #tpu.memory_space<vmem>>, vector<1x1xf32>
      tpu.vector_store %arg9[%c0_43, %c0_44], %51 {strides = array<i32>} : memref<1x1xf32, #tpu.memory_space<vmem>>, vector<1x1xf32>,
      %cst_45 = arith.constant 0.000000e+00 : f32
      %53 = vector.broadcast %cst_45 : f32 to vector<1x1xf32>
      %c0_46 = arith.constant 0 : index
      %c0_47 = arith.constant 0 : index
      %54 = vector.load %arg10[%c0_46, %c0_47] : memref<1x1xf32, #tpu.memory_space<vmem>>, vector<1x1xf32>
      tpu.vector_store %arg10[%c0_46, %c0_47], %53 {strides = array<i32>} : memref<1x1xf32, #tpu.memory_space<vmem>>, vector<1x1xf32>,
    } else {
    }
    %c0 = arith.constant 0 : index
    %c0_1 = arith.constant 0 : index
    %3 = vector.load %arg2[%c0, %c0_1] : memref<8x128xf32, #tpu.memory_space<vmem>>, vector<8x128xf32>
    %c0_2 = arith.constant 0 : index
    %c0_3 = arith.constant 0 : index
    %4 = vector.load %arg3[%c0_2, %c0_3] : memref<8x128xf32, #tpu.memory_space<vmem>>, vector<8x128xf32>
    %5 = math.exp %3 : vector<8x128xf32>
    %c0_4 = arith.constant 0 : index
    %c0_5 = arith.constant 0 : index
    %6 = vector.load %arg4[%c0_4, %c0_5] : memref<128x128xf32, #tpu.memory_space<vmem>>, vector<128x128xf32>
    %cst = arith.constant dense<0.000000e+00> : vector<8x128xf32>
    %7 = tpu.matmul %5, %6, %cst {dimension_numbers = #tpu.dot_dimension_numbers<[1], [0], [0], [1], [0, 0, 1, 1], [], []>} : vector<8x128xf32>, vector<128x128xf32>, vector<8x128xf32> -> vector<8x128xf32>
    %8 = vector.extract_strided_slice %7 {offsets = [0, 127], sizes = [8, 1], strides = [1, 1]} : vector<8x128xf32> to vector<8x1xf32>
    %c0_6 = arith.constant 0 : index
    %c0_7 = arith.constant 0 : index
    %9 = vector.load %arg5[%c0_6, %c0_7] : memref<8x8xf32, #tpu.memory_space<vmem>>, vector<8x8xf32>
    %cst_8 = arith.constant dense<0.000000e+00> : vector<8x1xf32>
    %10 = tpu.matmul %9, %8, %cst_8 {dimension_numbers = #tpu.dot_dimension_numbers<[1], [0], [0], [1], [0, 0, 1, 1], [], []>} : vector<8x8xf32>, vector<8x1xf32>, vector<8x1xf32> -> vector<8x1xf32>
    %c0_9 = arith.constant 0 : index
    %c0_10 = arith.constant 0 : index
    %11 = vector.load %arg7[%c0_9, %c0_10] : memref<1x1xf32, #tpu.memory_space<vmem>>, vector<1x1xf32>
    %12 = vector.broadcast %11 : vector<1x1xf32> to vector<8x1xf32>
    %13 = arith.addf %10, %12 : vector<8x1xf32>
    %14 = vector.broadcast %13 : vector<8x1xf32> to vector<8x128xf32>
    %15 = arith.addf %7, %14 : vector<8x128xf32>
    %16 = math.log %15 : vector<8x128xf32>
    %c0_11 = arith.constant 0 : index
    %c0_12 = arith.constant 0 : index
    %17 = vector.load %arg8[%c0_11, %c0_12] : memref<1x1xf32, #tpu.memory_space<vmem>>, vector<1x1xf32>
    %cst_13 = arith.constant dense<0.000000e+00> : vector<8xf32>
    %18 = vector.multi_reduction <add>, %3, %cst_13 [1] : vector<8x128xf32> to vector<8xf32>
    %19 = vector.shape_cast %18 : vector<8xf32> to vector<8x1xf32>
    %cst_14 = arith.constant dense<0.000000e+00> : vector<1xf32>
    %20 = vector.multi_reduction <add>, %19, %cst_14 [0] : vector<8x1xf32> to vector<1xf32>
    %21 = vector.shape_cast %20 : vector<1xf32> to vector<1x1xf32>
    %22 = arith.addf %17, %21 : vector<1x1xf32>
    %c0_15 = arith.constant 0 : index
    %c0_16 = arith.constant 0 : index
    %23 = vector.load %arg8[%c0_15, %c0_16] : memref<1x1xf32, #tpu.memory_space<vmem>>, vector<1x1xf32>
    tpu.vector_store %arg8[%c0_15, %c0_16], %22 {strides = array<i32>} : memref<1x1xf32, #tpu.memory_space<vmem>>, vector<1x1xf32>,
    %c0_17 = arith.constant 0 : index
    %c0_18 = arith.constant 0 : index
    %24 = vector.load %arg9[%c0_17, %c0_18] : memref<1x1xf32, #tpu.memory_space<vmem>>, vector<1x1xf32>
    %cst_19 = arith.constant dense<0.000000e+00> : vector<8xf32>
    %25 = vector.multi_reduction <add>, %4, %cst_19 [1] : vector<8x128xf32> to vector<8xf32>
    %26 = vector.shape_cast %25 : vector<8xf32> to vector<8x1xf32>
    %cst_20 = arith.constant dense<0.000000e+00> : vector<1xf32>
    %27 = vector.multi_reduction <add>, %26, %cst_20 [0] : vector<8x1xf32> to vector<1xf32>
    %28 = vector.shape_cast %27 : vector<1xf32> to vector<1x1xf32>
    %29 = arith.addf %24, %28 : vector<1x1xf32>
    %c0_21 = arith.constant 0 : index
    %c0_22 = arith.constant 0 : index
    %30 = vector.load %arg9[%c0_21, %c0_22] : memref<1x1xf32, #tpu.memory_space<vmem>>, vector<1x1xf32>
    tpu.vector_store %arg9[%c0_21, %c0_22], %29 {strides = array<i32>} : memref<1x1xf32, #tpu.memory_space<vmem>>, vector<1x1xf32>,
    %c0_23 = arith.constant 0 : index
    %c0_24 = arith.constant 0 : index
    %31 = vector.load %arg10[%c0_23, %c0_24] : memref<1x1xf32, #tpu.memory_space<vmem>>, vector<1x1xf32>
    %32 = arith.mulf %4, %16 : vector<8x128xf32>
    %cst_25 = arith.constant dense<0.000000e+00> : vector<8xf32>
    %33 = vector.multi_reduction <add>, %32, %cst_25 [1] : vector<8x128xf32> to vector<8xf32>
    %34 = vector.shape_cast %33 : vector<8xf32> to vector<8x1xf32>
    %cst_26 = arith.constant dense<0.000000e+00> : vector<1xf32>
    %35 = vector.multi_reduction <add>, %34, %cst_26 [0] : vector<8x1xf32> to vector<1xf32>
    %36 = vector.shape_cast %35 : vector<1xf32> to vector<1x1xf32>
    %37 = arith.addf %31, %36 : vector<1x1xf32>
    %c0_27 = arith.constant 0 : index
    %c0_28 = arith.constant 0 : index
    %38 = vector.load %arg10[%c0_27, %c0_28] : memref<1x1xf32, #tpu.memory_space<vmem>>, vector<1x1xf32>
    tpu.vector_store %arg10[%c0_27, %c0_28], %37 {strides = array<i32>} : memref<1x1xf32, #tpu.memory_space<vmem>>, vector<1x1xf32>,
    %c0_29 = arith.constant 0 : index
    %c0_30 = arith.constant 0 : index
    %39 = vector.load %arg7[%c0_29, %c0_30] : memref<1x1xf32, #tpu.memory_space<vmem>>, vector<1x1xf32>
    %cst_31 = arith.constant dense<0.000000e+00> : vector<1xf32>
    %40 = vector.multi_reduction <add>, %8, %cst_31 [0] : vector<8x1xf32> to vector<1xf32>
    %41 = vector.shape_cast %40 : vector<1xf32> to vector<1x1xf32>
    %42 = arith.addf %39, %41 : vector<1x1xf32>
    %c0_32 = arith.constant 0 : index
    %c0_33 = arith.constant 0 : index
    %43 = vector.load %arg7[%c0_32, %c0_33] : memref<1x1xf32, #tpu.memory_space<vmem>>, vector<1x1xf32>
    tpu.vector_store %arg7[%c0_32, %c0_33], %42 {strides = array<i32>} : memref<1x1xf32, #tpu.memory_space<vmem>>, vector<1x1xf32>,
    %c0_i32_34 = arith.constant 0 : i32
    %44 = arith.cmpi eq, %arg0, %c0_i32_34 : i32
    %45 = arith.extui %44 : i1 to i32
    %c0_i32_35 = arith.constant 0 : i32
    %46 = arith.cmpi ne, %45, %c0_i32_35 : i32
    scf.if %46 {
      %c0_36 = arith.constant 0 : index
      %47 = memref.load %arg1[%c0_36] : memref<1xi32, #tpu.memory_space<smem>>
      %48 = arith.sitofp %47 : i32 to f32
      %c0_37 = arith.constant 0 : index
      %c0_38 = arith.constant 0 : index
      %49 = vector.load %arg8[%c0_37, %c0_38] : memref<1x1xf32, #tpu.memory_space<vmem>>, vector<1x1xf32>
      %c0_39 = arith.constant 0 : index
      %c0_40 = arith.constant 0 : index
      %50 = vector.load %arg9[%c0_39, %c0_40] : memref<1x1xf32, #tpu.memory_space<vmem>>, vector<1x1xf32>
      %c0_41 = arith.constant 0 : index
      %c0_42 = arith.constant 0 : index
      %51 = vector.load %arg10[%c0_41, %c0_42] : memref<1x1xf32, #tpu.memory_space<vmem>>, vector<1x1xf32>
      %52 = arith.mulf %50, %49 : vector<1x1xf32>
      %53 = vector.broadcast %48 : f32 to vector<1x1xf32>
      %54 = arith.mulf %53, %51 : vector<1x1xf32>
      %55 = arith.subf %52, %54 : vector<1x1xf32>
      %cst_43 = arith.constant 0.000000e+00 : f32
      %56 = vector.broadcast %cst_43 : f32 to vector<1x1xf32>
      %57 = arith.subf %56, %55 : vector<1x1xf32>
      %58 = arith.divf %57, %50 : vector<1x1xf32>
      %c0_44 = arith.constant 0 : index
      %c0_45 = arith.constant 0 : index
      %59 = vector.load %arg6[%c0_44, %c0_45] : memref<1x1xf32, #tpu.memory_space<vmem>>, vector<1x1xf32>
      tpu.vector_store %arg6[%c0_44, %c0_45], %58 {strides = array<i32>} : memref<1x1xf32, #tpu.memory_space<vmem>>, vector<1x1xf32>,
    } else {
    }
    return
  }
  func.func @transform_0(%arg0: i32, %arg1: memref<1xi32, #tpu.memory_space<smem>>) -> (i32, i32) {
    %c0_i32 = arith.constant 0 : i32
    %c0_i32_0 = arith.constant 0 : i32
    return %arg0, %c0_i32 : i32, i32
  }
  func.func @transform_1(%arg0: i32, %arg1: memref<1xi32, #tpu.memory_space<smem>>) -> (i32, i32) {
    %c0_i32 = arith.constant 0 : i32
    %c0_i32_0 = arith.constant 0 : i32
    return %arg0, %c0_i32 : i32, i32
  }
  func.func @transform_2(%arg0: i32, %arg1: memref<1xi32, #tpu.memory_space<smem>>) -> (i32, i32) {
    %c0_i32 = arith.constant 0 : i32
    %c0_i32_0 = arith.constant 0 : i32
    %c0_i32_1 = arith.constant 0 : i32
    return %c0_i32, %c0_i32_0 : i32, i32
  }
  func.func @transform_3(%arg0: i32, %arg1: memref<1xi32, #tpu.memory_space<smem>>) -> (i32, i32) {
    %c0_i32 = arith.constant 0 : i32
    %c0_i32_0 = arith.constant 0 : i32
    %c0_i32_1 = arith.constant 0 : i32
    return %c0_i32, %c0_i32_0 : i32, i32
  }
  func.func @transform_4(%arg0: i32, %arg1: memref<1xi32, #tpu.memory_space<smem>>) -> (i32, i32) {
    %c0_i32 = arith.constant 0 : i32
    %c0_i32_0 = arith.constant 0 : i32
    %c0_i32_1 = arith.constant 0 : i32
    return %c0_i32, %c0_i32_0 : i32, i32
  }
}

</mosaic_0001>

<bundles_post_ra>
// kernel: cox_loss.1
= control target key start
LH: loop header
LB: loop body
LE: loop exit
PB: predicated region body
PF: predicated region fallthrough
CT: control target
= control target key end

     0   :  { %vm24_vm0 = vcmask 0   ;;  %v430_v3 = vmov 0.0|0.0   ;;  %v431_v6 = vmov 0.0   ;;  %vm432_vm1 = vmmov 0   ;;  %s550_s0 = inlined_call_operand.<no memory space> [shape: s32[1], index: 0, kind: input, shape index: {}]   ;;  %s551_s1 = inlined_call_operand.vmem [shape: f32[8,128], index: 1, kind: input, shape index: {}]   ;;  %s552_s2 = inlined_call_operand.vmem [shape: f32[8,128], index: 2, kind: input, shape index: {}]   ;;  %s553_s3 = inlined_call_operand.vmem [shape: f32[128,128], index: 3, kind: input, shape index: {}]   ;;  %s554_s4 = inlined_call_operand.vmem [shape: f32[8,8], index: 4, kind: input, shape index: {}]   ;;  %s555_s5 = inlined_call_operand.hbm [shape: f32[1,1], index: 5, kind: output, shape index: {}]  }
   0x1   :  { %v33_v0 = vld [vmem:[%s553_s3] sm:$0xff]  ;;  %v34_v1 = vld [vmem:[%s553_s3 + $0x8] sm:$0xff]  ;;  %v35_v2 = vld [vmem:[%s553_s3 + $0x10] sm:$0xff]  ;;  %368 = vmatprep.subr.bf16.mxu0 %v430_v3  ;;  %25 = vst.msk [vmem:[#allocation2] sm:$0x1] %vm24_vm0, %v431_v6  ;;  %363 = vmatprep.subr.mxu1 %v431_v6 }
   0x2   :  { %v369_v4 = vpack.c.bf16 %v34_v1, %v33_v0  ;;  %v36_v5 = vld [vmem:[%s553_s3 + $0x18] sm:$0xff]  ;;  %26 = vst.msk [vmem:[#allocation3] sm:$0x1] %vm24_vm0, %v431_v6  ;;  %27 = vst.msk [vmem:[#allocation4] sm:$0x1] %vm24_vm0, %v431_v6  ;;  %360 = vmatprep.mubr.msk.f32.mxu0 %vm432_vm1, %v431_v6  ;;  %365 = vmatprep.mubr.msk.f32.mxu1 %vm432_vm1, %v431_v6  ;;  %v37_v8 = vld [vmem:[%s553_s3 + $0x20] sm:$0xff] }
   0x3   :  { %28 = vst.msk [vmem:[#allocation5] sm:$0x1] %vm24_vm0, %v431_v6  ;;  %v372_v7 = vpack.c.bf16 %v36_v5, %v35_v2  ;;  %v38_v9 = vld [vmem:[%s553_s3 + $0x28] sm:$0xff] }
   0x4   :  { %370 = vmatpush3.bf16.msra.mxu0 %v369_v4 }
   0x5   :  { %371 = vmatprep.subr.bf16.mxu0 %v430_v3 }
   0x6   :  { %11 = vsyncpa [#allocation9], 0  ;;  %v375_v10 = vpack.c.bf16 %v38_v9, %v37_v8  ;;  %v39_v11 = vld [vmem:[%s553_s3 + $0x30] sm:$0xff]  ;;  %v40_v12 = vld [vmem:[%s553_s3 + $0x38] sm:$0xff]  ;;  %s433_s26 = smov 1   ;;  %vm131_vm2 = vcmask 64512   ;;  %v261_v42 = vlaneseq  ;;  %s281_s30 = scvt.s32.f32 %s550_s0 }
   0x7   :  { %v378_v13 = vpack.c.bf16 %v40_v12, %v39_v11  ;;  %v41_v14 = vld [vmem:[%s553_s3 + $0x40] sm:$0xff]  ;;  %v42_v15 = vld [vmem:[%s553_s3 + $0x48] sm:$0xff]  ;;  %v43_v18 = vld [vmem:[%s553_s3 + $0x50] sm:$0xff]  ;;  %v434_v33 = vmov 0   ;;  %vm249_vm3 = vcmask 1048568   ;;  %s436_s6 = smov [#allocation8]  }
   0x8   :  { %373 = vmatpush3.bf16.msra.mxu0 %v372_v7  ;;  %v29_v16 = vld [vmem:[%s551_s1] sm:$0xff]  ;;  %v381_v17 = vpack.c.bf16 %v42_v15, %v41_v14  ;;  %v44_v19 = vld [vmem:[%s553_s3 + $0x58] sm:$0xff]  ;;  %v46_v23 = vld [vmem:[%s553_s3 + $0x68] sm:$0xff]  ;;  %399 = vset.pattern.permute.xlu0 %v434_v33  ;;  %v435_v40 = vmov 1966171168   ;;  %v262_v45 = vshrl.u32 %v261_v42, 7 }
   0x9   :  { %374 = vmatprep.subr.bf16.mxu0 %v430_v3  ;;  %v31_v20 = vmul.f32 1.442695, %v29_v16  ;;  %v384_v21 = vpack.c.bf16 %v44_v19, %v43_v18  ;;  %v45_v22 = vld [vmem:[%s553_s3 + $0x60] sm:$0xff]  ;;  %v47_v25 = vld [vmem:[%s553_s3 + $0x70] sm:$0xff]  ;;  %v48_v26 = vld [vmem:[%s553_s3 + $0x78] sm:$0xff]  ;;  %v259_v41 = vunpack.c.l.s4 %v435_v40  ;;  %s299_s7 = sshll.u32 %s436_s6, 4  ;;  %s300_s7 = int_to_ptr.vmem [resolvable:$true] %s299_s7 }
   0xa   :  { %v387_v24 = vpack.c.bf16 %v46_v23, %v45_v22  ;;  %v390_v27 = vpack.c.bf16 %v48_v26, %v47_v25  ;;  %v119_v31 = vld [vmem:[%s554_s4] sm:$0xff]  ;;  %s406_s8 = scalar_lea.vmem %s300_s7, 16  ;;  %s410_s9 = scalar_lea.vmem %s300_s7, 32 }
   0xb   :  { %400 = vpow2.f32 %v31_v20  ;;  %v30_v34 = vld [vmem:[%s552_s2] sm:$0xff]  ;;  %v260_v44 = vunpack.c.0.s8 %v259_v41  ;;  %p407_p0 = scmp.ne.s32.totalorder %s300_s7, %s406_s8  ;;  %p411_p1 = scmp.lt.s32.totalorder %s300_s7, %s300_s7 }
   0xc   :  { %376 = vmatpush3.bf16.msra.mxu0 %v375_v10  ;;  %226 = vadd.xlane.f32.xlu1 %v30_v34  ;;  %v307_v48 = vld [vmem:[#allocation2] ss:$0 sm:$0xff]  ;;  %v225_v0 = vld [vmem:[#allocation4] sm:$0x1]  ;;  %v213_v5 = vld [vmem:[#allocation3] sm:$0x1]  ;;  %p412_p2 = scmp.lt.s32.totalorder %s410_s9, %s406_s8 }
   0xd   :  { %377 = vmatprep.subr.bf16.mxu0 %v430_v3  ;;  %v263_v47 = vsub.s32 %v260_v44, %v262_v45  ;;  %v248_v10 = vld [vmem:[#allocation2] sm:$0x1]  ;;  %v236_v22 = vld [vmem:[#allocation5] sm:$0x1] }
   0xe   :  { %p413_p3 = por %p412_p2, %p411_p1 }
  0x10   :  { %379 = vmatpush3.bf16.msra.mxu0 %v378_v13  ;;  %214 = vadd.xlane.f32.xlu1 %v29_v16  ;;  %p414_p4 = pnand %p413_p3, %p407_p0 }
  0x11   :  { %380 = vmatprep.subr.bf16.mxu0 %v430_v3 }
  0x14   :  { %382 = vmatpush3.bf16.msra.mxu0 %v381_v17 }
  0x15   :  { %383 = vmatprep.subr.bf16.mxu0 %v430_v3  ;;  %v401_v28 = vpop.eup %400 }
  0x18   :  { %385 = vmatpush3.bf16.msra.mxu0 %v384_v21 }
  0x19   :  { %386 = vmatprep.subr.bf16.mxu0 %v430_v3 }
  0x1c   :  { %388 = vmatpush3.bf16.msra.mxu0 %v387_v24 }
  0x1d   :  { %389 = vmatprep.subr.bf16.mxu0 %v430_v3 }
  0x20   :  { %391 = vmatpush3.bf16.msra.mxu0 %v390_v27  ;;  %v286_v27 = vstv %s281_s30 }
  0x23   :  { %361 = vmatmul.mubr.f32.vlgmr.msra.gmra.mrb[0].mxu0 %v401_v28 }
  0x99   :  { %v227_v54 = vpop.xlane.xlu1 %226 }
  0x9a   :  { %v228_v55 = vrot.slane %v227_v54, 4 }
  0x9c   :  { %v229_v56 = vadd.f32 %v228_v55, %v227_v54 }
  0x9d   :  { %v215_v57 = vpop.xlane.xlu1 %214 }
  0x9e   :  { %v230_v58 = vrot.slane %v229_v56, 2  ;;  %v216_v59 = vrot.slane %v215_v57, 4 }
  0xa0   :  { %v231_v60 = vadd.f32 %v230_v58, %v229_v56  ;;  %v217_v61 = vadd.f32 %v216_v59, %v215_v57 }
  0xa2   :  { %v232_v62 = vrot.slane %v231_v60, 1  ;;  %v218_v63 = vrot.slane %v217_v61, 2 }
  0xa4   :  { %v233_v1 = vadd.f32 %v232_v62, %v231_v60  ;;  %v219_v2 = vadd.f32 %v218_v63, %v217_v61 }
  0xa6   :  { %v234_v3 = vadd.f32 %v233_v1, %v225_v0  ;;  %v220_v4 = vrot.slane %v219_v2, 1 }
  0xa8   :  { %235 = vst.msk [vmem:[#allocation4] sm:$0x1] %vm24_vm0, %v234_v3  ;;  %v221_v6 = vadd.f32 %v220_v4, %v219_v2 }
  0xaa   :  { %v222_v7 = vadd.f32 %v221_v6, %v213_v5 }
  0xac   :  { %224 = vst.msk [vmem:[#allocation3] sm:$0x1] %vm24_vm0, %v222_v7 }
  0xaf   :  { %v283_v25 = vld [vmem:[#allocation4] sm:$0x1] }
  0xb3   :  { %v282_v26 = vld [vmem:[#allocation3] sm:$0x1] }
  0xf6   :  { %v115_v29 = vpop.f32.mrb[0].mxu0 }
  0xf7   :  { %128 = vrot.lane.b32.xlu0 %v115_v29, %s433_s26  ;;  %v362_v30 = vpop.f32.mrb[1].mxu0  ;;  %v250_v35 = vsel %vm249_vm3, %v115_v29, 0.0 }
  0xf8   :  { %v251_v36 = vrot.slane %v250_v35, 4 }
  0xfa   :  { %v252_v37 = vadd.f32 %v251_v36, %v250_v35 }
  0xfc   :  { %v253_v38 = vrot.slane %v252_v37, 2 }
  0xfe   :  { %v254_v39 = vadd.f32 %v253_v38, %v252_v37 }
 0x100   :  { %v255_v43 = vrot.slane %v254_v39, 1 }
 0x102   :  { %v256_v46 = vadd.f32 %v255_v43, %v254_v39 }
 0x104   :  { %v264_v52 = vrot.slane %v256_v46, %v263_v47 }
 0x106   :  { %v271_v53 = vrot.slane %v264_v52, %v263_v47 }
 0x169   :  { %v129_v32 = vpop.permute.xlu0 %128 }
 0x16a   :  { %364 = vmatpush3.msra.mxu1 %v129_v32 }
 0x16b   :  { %366 = vmatmul.mubr.msk.f32.vlgmr.msra.gmra.mrb[0].mxu1 %vm131_vm2, %v119_v31 }
 0x23e   :  { %v201_v49 = vpop.f32.mrb[0].mxu1 }
 0x23f   :  { %v202_v50 = vadd.f32 %v307_v48, %v201_v49  ;;  %v367_v51 = vpop.f32.mrb[1].mxu1 }
 0x241   :  { %207 = vperm.xlu0 %399, %v202_v50  }
 0x245   :  { %272 = vrot.lane.b32.xlu0 %v271_v53, %s433_s26 }
 0x2c0   :  { %v208_v8 = vpop.permute.xlu0 %207 }
 0x2c1   :  { %v210_v9 = vadd.f32 %v208_v8, %v115_v29  ;;  %v285_v29 = vmul.f32 %v283_v25, %v282_v26 }
 0x2c3   :  { %402 = vlog2.f32 %v210_v9 }
 0x2c4   :  { %v273_v11 = vpop.permute.xlu0 %272  ;;  %404 = vrcp.f32 %v283_v25 }
 0x2c5   :  { %v275_v12 = vadd.f32 %v273_v11, %v248_v10 }
 0x2c7   :  { %276 = vst.msk [vmem:[#allocation2] sm:$0x1] %vm24_vm0, %v275_v12 }
 0x2cd   :  { %v403_v13 = vpop.eup %402 }
 0x2ce   :  { %v212_v14 = vmul.f32 0.6931472, %v403_v13  ;;  %v405_v33 = vpop.eup %404 }
 0x2d0   :  { %v237_v15 = vmul.f32 %v212_v14, %v30_v34 }
 0x2d2   :  { %238 = vadd.xlane.f32.xlu1 %v237_v15 }
 0x35f   :  { %v239_v16 = vpop.xlane.xlu1 %238 }
 0x360   :  { %v240_v17 = vrot.slane %v239_v16, 4 }
 0x362   :  { %v241_v18 = vadd.f32 %v240_v17, %v239_v16 }
 0x364   :  { %v242_v19 = vrot.slane %v241_v18, 2 }
 0x366   :  { %v243_v20 = vadd.f32 %v242_v19, %v241_v18 }
 0x368   :  { %v244_v21 = vrot.slane %v243_v20, 1 }
 0x36a   :  { %v245_v23 = vadd.f32 %v244_v21, %v243_v20 }
 0x36c   :  { %v246_v24 = vadd.f32 %v245_v23, %v236_v22 }
 0x36e   :  { %247 = vst.msk [vmem:[#allocation5] sm:$0x1] %vm24_vm0, %v246_v24 }
 0x375   :  { %v284_v28 = vld [vmem:[#allocation5] sm:$0x1] }
 0x376   :  { %v287_v30 = vmul.f32 %v286_v27, %v284_v28 }
 0x378   :  { %v288_v31 = vsub.f32 %v285_v29, %v287_v30 }
 0x37a   :  { %v289_v32 = vsub.f32 0.0, %v288_v31 }
 0x37c   :  { %v291_v34 = vmul.f32 %v405_v33, %v289_v32 }
 0x37e   :  { %292 = vst.msk [vmem:[#allocation8] sm:$0x1] %vm24_vm0, %v291_v34 }
 0x37f   :  { %417 = shalt.err (!%p414_p4)
}
 0x380   :  { %s418_s11 = scalar_lea.hbm %s555_s5, 16 }
 0x381   :  { %p419_p5 = scmp.ne.s32.totalorder %s555_s5, %s418_s11  ;;  %p422_p6 = scmp.lt.u32.totalorder %s418_s11, %s555_s5 }
 0x383   :  { %p424_p7 = pnand %p422_p6, %p419_p5 }
 0x385   :  { %427 = shalt.err (!%p424_p7)
}
 0x386   :  { %302 = dma.vmem_to_hbm [thread:$0]  %s300_s7, 16, %s555_s5, [#allocation9]  }
 0x387   :  { %428 = dma.done.wait [#allocation9], 16  }
 0x388   :  { %429 = vsyncadd [#allocation9], 4294967280 }
 0x389   :  { %306 = vsyncpa [#allocation9], 1 }

</bundles_post_ra>
